<compile_context>
chip_gen: v5e
topology: v5e:2x2
jax: 0.10.0
libtpu: 0.0.40
codegen_flags: <defaults>
</compile_context>

<pallas_src>
import functools

import jax
import jax.numpy as jnp
from jax import lax
from jax.experimental import pallas as pl
from jax.experimental.pallas import tpu as pltpu

_NEG_INF = -1e30


def _plan_tiling(N, M, L, K, hidden, out_dim):
    """Pick the instance-tile size Nt and a VMEM limit that fit every TPU generation."""
    bf, f4 = 2, 4
    # Resident weights (constant index_map); count x2 for Pallas double buffering.
    w_bytes = 2 * ((M * L + L * K + K * M * hidden + hidden * out_dim) * bf
                   + (L + K + hidden + out_dim) * f4)
    scratch_bytes = (K * M + 2 * K) * f4
    # Size the streamed H tile against ~40 MiB so we stay inside v7x's 64 MiB VMEM.
    budget = max((40 << 20) - w_bytes - scratch_bytes, 1 << 20)
    nt = budget // (2 * max(M, 1) * bf)          # double-buffered bf16 (Nt, M) tile
    nt = int(max(8, min((nt // 8) * 8, 1024)))   # multiple of 8 sublanes
    n_pad8 = max(8, ((N + 7) // 8) * 8)
    nt = min(nt, n_pad8)
    n_pad = ((N + nt - 1) // nt) * nt
    need = w_bytes + scratch_bytes + 2 * nt * M * bf + (4 << 20)
    vmem_limit = int(max(32 << 20, need))
    return nt, n_pad, vmem_limit


def _attention_nn_kernel(h_ref, w1_ref, b1_ref, w2t_ref, b2_ref,
                         wn1_ref, bn1_ref, wn2_ref, bn2_ref,
                         out_ref, m_sc, l_sc, z_sc,
                         *, n_instances, nt, n_pad, k_branches):
    n = pl.program_id(1)
    n_last = pl.num_programs(1) - 1

    @pl.when(n == 0)
    def _init():
        m_sc[...] = jnp.full(m_sc.shape, _NEG_INF, jnp.float32)
        l_sc[...] = jnp.zeros(l_sc.shape, jnp.float32)
        z_sc[...] = jnp.zeros(z_sc.shape, jnp.float32)

    h_t = h_ref[...]                                                   # (Nt, M) bf16

    # Attention MLP: Linear(M,L) -> tanh -> Linear(L,K). Scores are produced as
    # (K, Nt) so the softmax reductions run along the lane axis.
    a1 = jnp.tanh(jnp.dot(h_t, w1_ref[...],
                          preferred_element_type=jnp.float32) + b1_ref[...])   # (Nt, L) f32
    s = lax.dot_general(w2t_ref[...], a1.astype(jnp.bfloat16),
                        (((1,), (1,)), ((), ())),
                        preferred_element_type=jnp.float32) + b2_ref[...]      # (K, Nt) f32

    # Mask instance-padding columns (only compiled in when padding actually exists).
    if n_pad != n_instances:
        col = lax.broadcasted_iota(jnp.int32, s.shape, 1) + n * nt
        s = jnp.where(col < n_instances, s, _NEG_INF)

    # Online softmax over instances, accumulating an unnormalized Z in f32 scratch.
    m_prev = m_sc[...]                                                 # (K, 1)
    m_new = jnp.maximum(m_prev, jnp.max(s, axis=1, keepdims=True))
    alpha = jnp.exp(m_prev - m_new)
    e = jnp.exp(s - m_new)                                             # (K, Nt) f32
    l_sc[...] = alpha * l_sc[...] + jnp.sum(e, axis=1, keepdims=True)
    z_sc[...] = alpha * z_sc[...] + jnp.dot(e.astype(jnp.bfloat16), h_t,
                                            preferred_element_type=jnp.float32)  # (K, M)
    m_sc[...] = m_new

    @pl.when(n == n_last)
    def _finalize():
        # Z = softmax(A)^T @ H ; normalize via the EUP approximate reciprocal.
        z = z_sc[...] * pl.reciprocal(l_sc[...], approx=True)          # (K, M) f32
        # NN head. Contract (K, M) against wn1 stored as (K, M, hidden) — avoids
        # the (K, M) -> (1, K*M) relayout reshape inside the kernel. The k loop is
        # static (typically K == 1 -> a single dot).
        acc = bn1_ref[...]                                             # (1, hidden) f32
        for k in range(k_branches):
            acc = acc + jnp.dot(z[k:k + 1, :].astype(jnp.bfloat16), wn1_ref[k],
                                preferred_element_type=jnp.float32)
        h1 = jnp.maximum(acc, 0.0)
        # TODO(synk): Dropout(p=0.5) is identity in eval mode; training-mode RNG mask
        # (pltpu.prng_seed + prng_random_bits) not implemented.
        out = jnp.dot(h1.astype(jnp.bfloat16), wn2_ref[...],
                      preferred_element_type=jnp.float32) + bn2_ref[...]
        out_ref[...] = out.astype(out_ref.dtype)


def attention_nn_forward(x, params):
    """x: (B, N, M) bags of instances (B=1 matches the torch module's (1, N, M) input).

    Returns (B, out_features) float32.
    """
    x = jnp.asarray(x)
    if x.ndim == 2:
        x = x[None]
    B, N, M = x.shape
    L = params["w1"].shape[1]
    K = params["w2"].shape[1]
    KM, hidden = params["wn1"].shape
    out_dim = params["wn2"].shape[1]
    assert KM == K * M, "NN in_features must equal K * M"

    nt, n_pad, vmem_limit = _plan_tiling(N, M, L, K, hidden, out_dim)

    # bf16 operands for the MXU (f32 accumulation happens inside the kernel).
    h = x.astype(jnp.bfloat16)
    if n_pad != N:
        h = jnp.pad(h, ((0, 0), (0, n_pad - N), (0, 0)))
    w1 = params["w1"].astype(jnp.bfloat16)                          # (M, L)
    w2t = params["w2"].T.astype(jnp.bfloat16)                       # (K, L): pre-transposed
    wn1 = params["wn1"].reshape(K, M, hidden).astype(jnp.bfloat16)  # (K, M, hidden)
    wn2 = params["wn2"].astype(jnp.bfloat16)                        # (hidden, out)
    b1 = params["b1"].reshape(1, L).astype(jnp.float32)
    b2 = params["b2"].reshape(K, 1).astype(jnp.float32)             # adds to (K, Nt) scores
    bn1 = params["bn1"].reshape(1, hidden).astype(jnp.float32)
    bn2 = params["bn2"].reshape(1, out_dim).astype(jnp.float32)

    grid = (B, n_pad // nt)
    const = lambda ndim: (lambda b, n: (0,) * ndim)

    kernel = functools.partial(_attention_nn_kernel,
                               n_instances=N, nt=nt, n_pad=n_pad, k_branches=K)

    flops = B * (2 * N * M * L + 2 * N * L * K + 2 * K * N * M
                 + 2 * K * M * hidden + 2 * hidden * out_dim)
    transcendentals = B * (N * L + N * K)
    bytes_accessed = (h.size * 2
                      + (w1.size + w2t.size + wn1.size + wn2.size) * 2
                      + (b1.size + b2.size + bn1.size + bn2.size) * 4
                      + B * out_dim * 4)

    out = pl.pallas_call(
        kernel,
        out_shape=jax.ShapeDtypeStruct((B, 1, out_dim), jnp.float32),
        grid=grid,
        in_specs=[
            pl.BlockSpec((None, nt, M), lambda b, n: (b, n, 0)),    # H: streamed per bag
            pl.BlockSpec((M, L), const(2)),                         # weights: resident
            pl.BlockSpec((1, L), const(2)),
            pl.BlockSpec((K, L), const(2)),
            pl.BlockSpec((K, 1), const(2)),
            pl.BlockSpec((K, M, hidden), const(3)),
            pl.BlockSpec((1, hidden), const(2)),
            pl.BlockSpec((hidden, out_dim), const(2)),
            pl.BlockSpec((1, out_dim), const(2)),
        ],
        out_specs=pl.BlockSpec((None, 1, out_dim), lambda b, n: (b, 0, 0)),
        scratch_shapes=[
            pltpu.VMEM((K, 1), jnp.float32),    # running max m
            pltpu.VMEM((K, 1), jnp.float32),    # running denominator l
            pltpu.VMEM((K, M), jnp.float32),    # unnormalized Z accumulator
        ],
        compiler_params=pltpu.CompilerParams(
            dimension_semantics=("parallel", "arbitrary"),   # bags across TCs (v7x)
            vmem_limit_bytes=vmem_limit),
        cost_estimate=pl.CostEstimate(flops=int(flops),
                                      transcendentals=int(transcendentals),
                                      bytes_accessed=int(bytes_accessed)),
    )(h, w1, b1, w2t, b2, wn1, bn1, wn2, bn2)
    return out.reshape(B, out_dim)


def init_params(key, M, L, K, out_features):
    """Deterministic PyTorch-Linear-style init (uniform(-1/sqrt(fan_in), 1/sqrt(fan_in)))."""
    hidden = round((K * M) / 2)   # matches the torch module's round()

    def lin(k, fan_in, fan_out):
        kw, kb = jax.random.split(k)
        bound = 1.0 / jnp.sqrt(jnp.float32(fan_in))
        w = jax.random.uniform(kw, (fan_in, fan_out), jnp.float32, -bound, bound)
        b = jax.random.uniform(kb, (1, fan_out), jnp.float32, -bound, bound)
        return w, b

    k1, k2, k3, k4 = jax.random.split(key, 4)
    w1, b1 = lin(k1, M, L)                        # attention Linear(M, L)
    w2, b2 = lin(k2, L, K)                        # attention Linear(L, K)
    wn1, bn1 = lin(k3, K * M, hidden)             # NN Linear(K*M, round(K*M/2))
    wn2, bn2 = lin(k4, hidden, out_features)      # NN Linear(hidden, out_features)
    return dict(w1=w1, b1=b1, w2=w2, b2=b2, wn1=wn1, bn1=bn1, wn2=wn2, bn2=bn2)


def reference_forward(x, params):
    """Pure-JAX f32 reference of the torch forward, vmapped over bags."""
    def one_bag(H):
        a = jnp.tanh(H @ params["w1"] + params["b1"]) @ params["w2"] + params["b2"]
        A = jax.nn.softmax(a.T, axis=1)                     # (K, N)
        Z = A @ H                                           # (K, M)
        h1 = jax.nn.relu(Z.reshape(1, -1) @ params["wn1"] + params["bn1"])
        return (h1 @ params["wn2"] + params["bn2"])[0]
    return jax.vmap(one_bag)(x)


if __name__ == "__main__":
    # Small shapes consistent with the module:
    #   B=2 bags (exercises the 'parallel' bag grid axis), N=8 instances,
    #   in_features M=32, decom_space L=16, ATTENTION_BRANCHES K=1,
    #   NN in_features = K*M = 32, NN out_features = 4.
    B, N, M, L, K, OUT = 2, 8, 32, 16, 1, 4

    key = jax.random.PRNGKey(0)
    kx, kp = jax.random.split(key)
    x = jax.random.normal(kx, (B, N, M), jnp.float32)
    params = init_params(kp, M, L, K, OUT)

    y = attention_nn_forward(x, params)
    jax.block_until_ready(y)
    assert y.shape == (B, OUT) and y.dtype == jnp.float32

    # Sanity check vs the f32 reference (tolerance accounts for bf16 MXU operands).
    y_ref = reference_forward(x, params)
    assert jnp.allclose(y, y_ref, atol=5e-2, rtol=5e-2), (y, y_ref)

    print("KERNEL_OK")
</pallas_src>

<mosaic_0001>
module attributes {stable_mosaic.version = 11 : i64} {
  func.func @_attention_nn_kernel(%arg0: i32, %arg1: i32, %arg2: memref<1x8x32xbf16, #tpu.memory_space<vmem>>, %arg3: memref<32x16xbf16, #tpu.memory_space<vmem>>, %arg4: memref<1x16xf32, #tpu.memory_space<vmem>>, %arg5: memref<1x16xbf16, #tpu.memory_space<vmem>>, %arg6: memref<1x1xf32, #tpu.memory_space<vmem>>, %arg7: memref<1x32x16xbf16, #tpu.memory_space<vmem>>, %arg8: memref<1x16xf32, #tpu.memory_space<vmem>>, %arg9: memref<16x4xbf16, #tpu.memory_space<vmem>>, %arg10: memref<1x4xf32, #tpu.memory_space<vmem>>, %arg11: memref<1x1x4xf32, #tpu.memory_space<vmem>>, %arg12: memref<1x1xf32, #tpu.memory_space<vmem>>, %arg13: memref<1x1xf32, #tpu.memory_space<vmem>>, %arg14: memref<1x32xf32, #tpu.memory_space<vmem>>) attributes {dimension_semantics = [#tpu.dimension_semantics<parallel>, #tpu.dimension_semantics<arbitrary>], iteration_bounds = array<i64: 2, 1>, scalar_prefetch = 0 : i64, scratch_operands = 3 : i64, tpu.core_type = #tpu.core_type<tc>, window_params = [{transform_indices = @transform_0, window_bounds = array<i64: 1, 8, 32>}, {pipeline_mode = #tpu.pipeline_mode<synchronous>, transform_indices = @transform_1, window_bounds = array<i64: 32, 16>}, {pipeline_mode = #tpu.pipeline_mode<synchronous>, transform_indices = @transform_2, window_bounds = array<i64: 1, 16>}, {pipeline_mode = #tpu.pipeline_mode<synchronous>, transform_indices = @transform_3, window_bounds = array<i64: 1, 16>}, {pipeline_mode = #tpu.pipeline_mode<synchronous>, transform_indices = @transform_4, window_bounds = array<i64: 1, 1>}, {pipeline_mode = #tpu.pipeline_mode<synchronous>, transform_indices = @transform_5, window_bounds = array<i64: 1, 32, 16>}, {pipeline_mode = #tpu.pipeline_mode<synchronous>, transform_indices = @transform_6, window_bounds = array<i64: 1, 16>}, {pipeline_mode = #tpu.pipeline_mode<synchronous>, transform_indices = @transform_7, window_bounds = array<i64: 16, 4>}, {pipeline_mode = #tpu.pipeline_mode<synchronous>, transform_indices = @transform_8, window_bounds = array<i64: 1, 4>}, {transform_indices = @transform_9, window_bounds = array<i64: 1, 1, 4>}]} {
    %c0_i32 = arith.constant 0 : i32
    %0 = arith.cmpi eq, %arg1, %c0_i32 : i32
    %1 = arith.extui %0 : i1 to i32
    %c0_i32_0 = arith.constant 0 : i32
    %2 = arith.cmpi ne, %1, %c0_i32_0 : i32
    scf.if %2 {
      %cst_29 = arith.constant -1.000000e+30 : f32
      %43 = vector.broadcast %cst_29 : f32 to vector<1x1xf32>
      %c0_30 = arith.constant 0 : index
      %c0_31 = arith.constant 0 : index
      %44 = vector.load %arg12[%c0_30, %c0_31] : memref<1x1xf32, #tpu.memory_space<vmem>>, vector<1x1xf32>
      tpu.vector_store %arg12[%c0_30, %c0_31], %43 {strides = array<i32>} : memref<1x1xf32, #tpu.memory_space<vmem>>, vector<1x1xf32>,
      %cst_32 = arith.constant 0.000000e+00 : f32
      %45 = vector.broadcast %cst_32 : f32 to vector<1x1xf32>
      %c0_33 = arith.constant 0 : index
      %c0_34 = arith.constant 0 : index
      %46 = vector.load %arg13[%c0_33, %c0_34] : memref<1x1xf32, #tpu.memory_space<vmem>>, vector<1x1xf32>
      tpu.vector_store %arg13[%c0_33, %c0_34], %45 {strides = array<i32>} : memref<1x1xf32, #tpu.memory_space<vmem>>, vector<1x1xf32>,
      %cst_35 = arith.constant 0.000000e+00 : f32
      %47 = vector.broadcast %cst_35 : f32 to vector<1x32xf32>
      %c0_36 = arith.constant 0 : index
      %c0_37 = arith.constant 0 : index
      %48 = vector.load %arg14[%c0_36, %c0_37] : memref<1x32xf32, #tpu.memory_space<vmem>>, vector<1x32xf32>
      tpu.vector_store %arg14[%c0_36, %c0_37], %47 {strides = array<i32>} : memref<1x32xf32, #tpu.memory_space<vmem>>, vector<1x32xf32>,
    } else {
    }
    %c0 = arith.constant 0 : index
    %c0_1 = arith.constant 0 : index
    %c0_2 = arith.constant 0 : index
    %3 = vector.load %arg2[%c0, %c0_1, %c0_2] : memref<1x8x32xbf16, #tpu.memory_space<vmem>>, vector<1x8x32xbf16>
    %4 = vector.shape_cast %3 : vector<1x8x32xbf16> to vector<8x32xbf16>
    %c0_3 = arith.constant 0 : index
    %c0_4 = arith.constant 0 : index
    %5 = vector.load %arg3[%c0_3, %c0_4] : memref<32x16xbf16, #tpu.memory_space<vmem>>, vector<32x16xbf16>
    %cst = arith.constant dense<0.000000e+00> : vector<8x16xf32>
    %6 = tpu.matmul %4, %5, %cst {dimension_numbers = #tpu.dot_dimension_numbers<[1], [0], [0], [1], [0, 0, 1, 1], [], []>} : vector<8x32xbf16>, vector<32x16xbf16>, vector<8x16xf32> -> vector<8x16xf32>
    %c0_5 = arith.constant 0 : index
    %c0_6 = arith.constant 0 : index
    %7 = vector.load %arg4[%c0_5, %c0_6] : memref<1x16xf32, #tpu.memory_space<vmem>>, vector<1x16xf32>
    %8 = vector.broadcast %7 : vector<1x16xf32> to vector<8x16xf32>
    %9 = arith.addf %6, %8 : vector<8x16xf32>
    %10 = math.tanh %9 : vector<8x16xf32>
    %c0_7 = arith.constant 0 : index
    %c0_8 = arith.constant 0 : index
    %11 = vector.load %arg5[%c0_7, %c0_8] : memref<1x16xbf16, #tpu.memory_space<vmem>>, vector<1x16xbf16>
    %12 = arith.truncf %10 : vector<8x16xf32> to vector<8x16xbf16>
    %cst_9 = arith.constant dense<0.000000e+00> : vector<1x8xf32>
    %13 = tpu.matmul %11, %12, %cst_9 {dimension_numbers = #tpu.dot_dimension_numbers<[1], [1], [0], [0], [0, 0, 1, 0], [], []>} : vector<1x16xbf16>, vector<8x16xbf16>, vector<1x8xf32> -> vector<1x8xf32>
    %c0_10 = arith.constant 0 : index
    %c0_11 = arith.constant 0 : index
    %14 = vector.load %arg6[%c0_10, %c0_11] : memref<1x1xf32, #tpu.memory_space<vmem>>, vector<1x1xf32>
    %15 = vector.broadcast %14 : vector<1x1xf32> to vector<1x8xf32>
    %16 = arith.addf %13, %15 : vector<1x8xf32>
    %c0_12 = arith.constant 0 : index
    %c0_13 = arith.constant 0 : index
    %17 = vector.load %arg12[%c0_12, %c0_13] : memref<1x1xf32, #tpu.memory_space<vmem>>, vector<1x1xf32>
    %cst_14 = arith.constant dense<0xFF800000> : vector<1xf32>
    %18 = vector.multi_reduction <maximumf>, %16, %cst_14 [1] : vector<1x8xf32> to vector<1xf32>
    %19 = vector.shape_cast %18 : vector<1xf32> to vector<1x1xf32>
    %20 = arith.maximumf %17, %19 : vector<1x1xf32>
    %21 = arith.subf %17, %20 : vector<1x1xf32>
    %22 = math.exp %21 : vector<1x1xf32>
    %23 = vector.broadcast %20 : vector<1x1xf32> to vector<1x8xf32>
    %24 = arith.subf %16, %23 : vector<1x8xf32>
    %25 = math.exp %24 : vector<1x8xf32>
    %c0_15 = arith.constant 0 : index
    %c0_16 = arith.constant 0 : index
    %26 = vector.load %arg13[%c0_15, %c0_16] : memref<1x1xf32, #tpu.memory_space<vmem>>, vector<1x1xf32>
    %27 = arith.mulf %22, %26 : vector<1x1xf32>
    %cst_17 = arith.constant dense<0.000000e+00> : vector<1xf32>
    %28 = vector.multi_reduction <add>, %25, %cst_17 [1] : vector<1x8xf32> to vector<1xf32>
    %29 = vector.shape_cast %28 : vector<1xf32> to vector<1x1xf32>
    %30 = arith.addf %27, %29 : vector<1x1xf32>
    %c0_18 = arith.constant 0 : index
    %c0_19 = arith.constant 0 : index
    %31 = vector.load %arg13[%c0_18, %c0_19] : memref<1x1xf32, #tpu.memory_space<vmem>>, vector<1x1xf32>
    tpu.vector_store %arg13[%c0_18, %c0_19], %30 {strides = array<i32>} : memref<1x1xf32, #tpu.memory_space<vmem>>, vector<1x1xf32>,
    %c0_20 = arith.constant 0 : index
    %c0_21 = arith.constant 0 : index
    %32 = vector.load %arg14[%c0_20, %c0_21] : memref<1x32xf32, #tpu.memory_space<vmem>>, vector<1x32xf32>
    %33 = vector.broadcast %22 : vector<1x1xf32> to vector<1x32xf32>
    %34 = arith.mulf %33, %32 : vector<1x32xf32>
    %35 = arith.truncf %25 : vector<1x8xf32> to vector<1x8xbf16>
    %cst_22 = arith.constant dense<0.000000e+00> : vector<1x32xf32>
    %36 = tpu.matmul %35, %4, %cst_22 {dimension_numbers = #tpu.dot_dimension_numbers<[1], [0], [0], [1], [0, 0, 1, 1], [], []>} : vector<1x8xbf16>, vector<8x32xbf16>, vector<1x32xf32> -> vector<1x32xf32>
    %37 = arith.addf %34, %36 : vector<1x32xf32>
    %c0_23 = arith.constant 0 : index
    %c0_24 = arith.constant 0 : index
    %38 = vector.load %arg14[%c0_23, %c0_24] : memref<1x32xf32, #tpu.memory_space<vmem>>, vector<1x32xf32>
    tpu.vector_store %arg14[%c0_23, %c0_24], %37 {strides = array<i32>} : memref<1x32xf32, #tpu.memory_space<vmem>>, vector<1x32xf32>,
    %c0_25 = arith.constant 0 : index
    %c0_26 = arith.constant 0 : index
    %39 = vector.load %arg12[%c0_25, %c0_26] : memref<1x1xf32, #tpu.memory_space<vmem>>, vector<1x1xf32>
    tpu.vector_store %arg12[%c0_25, %c0_26], %20 {strides = array<i32>} : memref<1x1xf32, #tpu.memory_space<vmem>>, vector<1x1xf32>,
    %c0_i32_27 = arith.constant 0 : i32
    %40 = arith.cmpi eq, %arg1, %c0_i32_27 : i32
    %41 = arith.extui %40 : i1 to i32
    %c0_i32_28 = arith.constant 0 : i32
    %42 = arith.cmpi ne, %41, %c0_i32_28 : i32
    scf.if %42 {
      %c0_29 = arith.constant 0 : index
      %c0_30 = arith.constant 0 : index
      %43 = vector.load %arg14[%c0_29, %c0_30] : memref<1x32xf32, #tpu.memory_space<vmem>>, vector<1x32xf32>
      %c0_31 = arith.constant 0 : index
      %c0_32 = arith.constant 0 : index
      %44 = vector.load %arg13[%c0_31, %c0_32] : memref<1x1xf32, #tpu.memory_space<vmem>>, vector<1x1xf32>
      %45 = tpu.reciprocal %44 {approx = true} : vector<1x1xf32> -> vector<1x1xf32>
      %46 = vector.broadcast %45 : vector<1x1xf32> to vector<1x32xf32>
      %47 = arith.mulf %43, %46 : vector<1x32xf32>
      %c0_33 = arith.constant 0 : index
      %c0_34 = arith.constant 0 : index
      %48 = vector.load %arg8[%c0_33, %c0_34] : memref<1x16xf32, #tpu.memory_space<vmem>>, vector<1x16xf32>
      %49 = arith.truncf %47 : vector<1x32xf32> to vector<1x32xbf16>
      %c0_35 = arith.constant 0 : index
      %c0_36 = arith.constant 0 : index
      %c0_37 = arith.constant 0 : index
      %50 = vector.load %arg7[%c0_35, %c0_36, %c0_37] : memref<1x32x16xbf16, #tpu.memory_space<vmem>>, vector<1x32x16xbf16>
      %51 = vector.shape_cast %50 : vector<1x32x16xbf16> to vector<32x16xbf16>
      %cst_38 = arith.constant dense<0.000000e+00> : vector<1x16xf32>
      %52 = tpu.matmul %49, %51, %cst_38 {dimension_numbers = #tpu.dot_dimension_numbers<[1], [0], [0], [1], [0, 0, 1, 1], [], []>} : vector<1x32xbf16>, vector<32x16xbf16>, vector<1x16xf32> -> vector<1x16xf32>
      %53 = arith.addf %48, %52 : vector<1x16xf32>
      %cst_39 = arith.constant 0.000000e+00 : f32
      %54 = vector.broadcast %cst_39 : f32 to vector<1x16xf32>
      %55 = arith.maximumf %53, %54 : vector<1x16xf32>
      %56 = arith.truncf %55 : vector<1x16xf32> to vector<1x16xbf16>
      %c0_40 = arith.constant 0 : index
      %c0_41 = arith.constant 0 : index
      %57 = vector.load %arg9[%c0_40, %c0_41] : memref<16x4xbf16, #tpu.memory_space<vmem>>, vector<16x4xbf16>
      %cst_42 = arith.constant dense<0.000000e+00> : vector<1x4xf32>
      %58 = tpu.matmul %56, %57, %cst_42 {dimension_numbers = #tpu.dot_dimension_numbers<[1], [0], [0], [1], [0, 0, 1, 1], [], []>} : vector<1x16xbf16>, vector<16x4xbf16>, vector<1x4xf32> -> vector<1x4xf32>
      %c0_43 = arith.constant 0 : index
      %c0_44 = arith.constant 0 : index
      %59 = vector.load %arg10[%c0_43, %c0_44] : memref<1x4xf32, #tpu.memory_space<vmem>>, vector<1x4xf32>
      %60 = arith.addf %58, %59 : vector<1x4xf32>
      %c0_45 = arith.constant 0 : index
      %c0_46 = arith.constant 0 : index
      %c0_47 = arith.constant 0 : index
      %61 = vector.load %arg11[%c0_45, %c0_46, %c0_47] : memref<1x1x4xf32, #tpu.memory_space<vmem>>, vector<1x1x4xf32>
      %62 = vector.shape_cast %61 : vector<1x1x4xf32> to vector<1x4xf32>
      %63 = vector.shape_cast %60 : vector<1x4xf32> to vector<1x1x4xf32>
      tpu.vector_store %arg11[%c0_45, %c0_46, %c0_47], %63 {strides = array<i32>} : memref<1x1x4xf32, #tpu.memory_space<vmem>>, vector<1x1x4xf32>,
    } else {
    }
    return
  }
  func.func @transform_0(%arg0: i32, %arg1: i32) -> (i32, i32, i32) {
    %c0_i32 = arith.constant 0 : i32
    %c0_i32_0 = arith.constant 0 : i32
    return %arg0, %arg1, %c0_i32 : i32, i32, i32
  }
  func.func @transform_1(%arg0: i32, %arg1: i32) -> (i32, i32) {
    %c0_i32 = arith.constant 0 : i32
    %c0_i32_0 = arith.constant 0 : i32
    %c0_i32_1 = arith.constant 0 : i32
    return %c0_i32, %c0_i32_0 : i32, i32
  }
  func.func @transform_2(%arg0: i32, %arg1: i32) -> (i32, i32) {
    %c0_i32 = arith.constant 0 : i32
    %c0_i32_0 = arith.constant 0 : i32
    %c0_i32_1 = arith.constant 0 : i32
    return %c0_i32, %c0_i32_0 : i32, i32
  }
  func.func @transform_3(%arg0: i32, %arg1: i32) -> (i32, i32) {
    %c0_i32 = arith.constant 0 : i32
    %c0_i32_0 = arith.constant 0 : i32
    %c0_i32_1 = arith.constant 0 : i32
    return %c0_i32, %c0_i32_0 : i32, i32
  }
  func.func @transform_4(%arg0: i32, %arg1: i32) -> (i32, i32) {
    %c0_i32 = arith.constant 0 : i32
    %c0_i32_0 = arith.constant 0 : i32
    %c0_i32_1 = arith.constant 0 : i32
    return %c0_i32, %c0_i32_0 : i32, i32
  }
  func.func @transform_5(%arg0: i32, %arg1: i32) -> (i32, i32, i32) {
    %c0_i32 = arith.constant 0 : i32
    %c0_i32_0 = arith.constant 0 : i32
    %c0_i32_1 = arith.constant 0 : i32
    %c0_i32_2 = arith.constant 0 : i32
    return %c0_i32, %c0_i32_0, %c0_i32_1 : i32, i32, i32
  }
  func.func @transform_6(%arg0: i32, %arg1: i32) -> (i32, i32) {
    %c0_i32 = arith.constant 0 : i32
    %c0_i32_0 = arith.constant 0 : i32
    %c0_i32_1 = arith.constant 0 : i32
    return %c0_i32, %c0_i32_0 : i32, i32
  }
  func.func @transform_7(%arg0: i32, %arg1: i32) -> (i32, i32) {
    %c0_i32 = arith.constant 0 : i32
    %c0_i32_0 = arith.constant 0 : i32
    %c0_i32_1 = arith.constant 0 : i32
    return %c0_i32, %c0_i32_0 : i32, i32
  }
  func.func @transform_8(%arg0: i32, %arg1: i32) -> (i32, i32) {
    %c0_i32 = arith.constant 0 : i32
    %c0_i32_0 = arith.constant 0 : i32
    %c0_i32_1 = arith.constant 0 : i32
    return %c0_i32, %c0_i32_0 : i32, i32
  }
  func.func @transform_9(%arg0: i32, %arg1: i32) -> (i32, i32, i32) {
    %c0_i32 = arith.constant 0 : i32
    %c0_i32_0 = arith.constant 0 : i32
    %c0_i32_1 = arith.constant 0 : i32
    return %arg0, %c0_i32, %c0_i32_0 : i32, i32, i32
  }
}

</mosaic_0001>

<bundles_post_ra>
// kernel: tpu_custom_call.1
= control target key start
LH: loop header
LB: loop body
LE: loop exit
PB: predicated region body
PF: predicated region fallthrough
CT: control target
= control target key end

     0   :  { %s1026_s0 = inlined_call_operand.vmem [shape: bf16[2,8,32], index: 0, kind: input, shape index: {}]   ;;  %s1027_s1 = inlined_call_operand.vmem [shape: bf16[32,16], index: 1, kind: input, shape index: {}]   ;;  %s1028_s2 = inlined_call_operand.vmem [shape: f32[1,16], index: 2, kind: input, shape index: {}]   ;;  %s1029_s3 = inlined_call_operand.vmem [shape: bf16[1,16], index: 3, kind: input, shape index: {}]   ;;  %s1030_s4 = inlined_call_operand.<no memory space> [shape: f32[1,1], index: 4, kind: input, shape index: {}]   ;;  %s1031_s5 = inlined_call_operand.vmem [shape: bf16[1,32,16], index: 5, kind: input, shape index: {}]   ;;  %s1032_s6 = inlined_call_operand.vmem [shape: f32[1,16], index: 6, kind: input, shape index: {}]   ;;  %s1033_s7 = inlined_call_operand.vmem [shape: bf16[16,4], index: 7, kind: input, shape index: {}]   ;;  %s1034_s8 = inlined_call_operand.vmem [shape: f32[1,4], index: 8, kind: input, shape index: {}]   ;;  %s1035_s9 = inlined_call_operand.hbm [shape: f32[2,1,4], index: 9, kind: output, shape index: {}]  }
   0x1   :  { %v14_v0 = vstv %s1030_s4 }
   0x2   :  { %15 = vst [vmem:[#allocation5] sm:$0x1] %v14_v0 }
   0x3   :  { %16 = vsyncpa [#allocation7], 0 }
   0x4   :  { %18 = vsyncpa [#allocation7 + $0x1], 0  ;;  %s889_s11 = smov 0   ;;  %s891_s12 = smov 0  }
   0x5   :  { %s893_s13 = smov 0   ;;  %s895_s14 = smov 0  }
   0x6   :  { %s897_s15 = smov 0   ;;  %s899_s16 = smov 0  }
   0x7 LB: > { %s645_s4 = sadd.s32 4294967295, %s831_s16   ;;  %s646_s17 = sadd.s32 4294967294, %s831_s16   ;;  %s831_s16 = sphi %s899_s16, %s24_s16   ;;  %s827_s15 = sphi %s897_s15, %s1042_s15   ;;  %s823_s14 = sphi %s895_s14, %s1041_s14   ;;  %s819_s13 = sphi %s893_s13, %s1040_s13   ;;  %s815_s12 = sphi %s891_s12, %s1039_s12   ;;  %s811_s11 = sphi %s889_s11, %s1038_s11  }
   0x8   : > { %s36_s18 = sadd.s32 1, %s827_s15  ;;  %s239_s19 = sadd.s32 1, %s819_s13 }
   0x9   : > { %p38_p0 = scmp.ge.s32.totalorder %s36_s18, 2  ;;  %p249_p1 = scmp.ne.s32.totalorder %s819_s13, %s815_s12 }
   0xa   : > { %p250_p2 = scmp.eq.s32.totalorder %s645_s4, 1  ;;  %p255_p3 = scmp.ne.s32.totalorder %s815_s12, %s811_s11 }
   0xb   : > { %s1044_s18 = smov (%p38_p0, %s36_s18), 0  ;;  %p256_p5 = scmp.eq.s32.totalorder %s646_s17, 1 }
   0xc   : > { %p929_p4 = por %p250_p2, %p249_p1  ;;  %s236_s21 = ssub.s32 %s827_s15, %s1044_s18 }
   0xd   : > { %p649_p6 = scmp.ge.s32.totalorder %s831_s16, 1  ;;  %p237_p7 = scmp.eq.s32.totalorder %s236_s21, 0 }
   0xe   : > { %p936_p8 = por %p256_p5, %p255_p3  ;;  %p308_p9 = scmp.lt.s32.totalorder %s831_s16, 3 }
   0xf   : > { %s942_s23 = scalar_select %p237_p7, %s819_s13, %s239_s19  }
  0x10   : > { %p309_p10 = pnand %p649_p6, %p308_p9 }
  0x11   : > { %p345_p11 = scmp.lt.s32.totalorder (!%p309_p10), %s823_s14, 1  ;;  %s343_s17 = sand.u32 (!%p309_p10), 1, %s815_s12  }
  0x12   : > { %312 = sbr.rel (%p309_p10) target bundleno = 1060 (0x424), region = 56  ;;  %s575_s24 = scalar_lea.hbm (!%p309_p10), %s1035_s9, %s823_s14 }
  0x13   : > { %s344_s27 = scalar_lea.vmem (!%p309_p10), [#allocation6], %s343_s17  ;;  %s567_s30 = scalar_lea.sflag (!%p309_p10), [#allocation7], %s343_s17 }
  0x14   : > { %s773_s21 = scalar_lea.hbm (!%p309_p10), %s1035_s9, 2 }
  0x17   : > { %v679_v1 = vld [vmem:[%s1027_s1 + $0x8] sm:$0xff]  ;;  %v678_v2 = vld [vmem:[%s1027_s1] sm:$0xff]  ;;  %s346_s28 = scalar_select %p345_p11, %s823_s14, 1  ;;  %vm383_vm0 = vcmask 261120   ;;  %v833_v5 = vmov 0   ;;  %vm410_vm1 = vcmask 130048  }
  0x18   : > { %393 = vmatpush.bf16.msra.mxu0 %v679_v1  ;;  %v403_v4 = vld [vmem:[#allocation5] sm:$0x1]  ;;  %741 = vset.pattern.permute.xlu0 %v833_v5  ;;  %v744_v6 = vld [vmem:[%s1028_s2] ss:$0 sm:$0xff]  ;;  %vm357_vm2 = vcmask 0   ;;  %vm431_vm3 = vcmask 57344  }
  0x19   : > { %s650_s29 = sshll.u32 %s346_s28, 2  ;;  %742 = vset.pattern.permute.xlu1 %v833_v5  ;;  %406 = vperm.xlu0 %741, %v403_v4   ;;  %v401_v13 = vld [vmem:[%s1029_s3] sm:$0x1]  ;;  %v834_v14 = vmov -1e+30   ;;  %v835_v21 = vmov 0.0  }
  0x1a   : > { %s351_s4 = scalar_lea.vmem %s1026_s0, %s650_s29  ;;  %743 = vset.pattern.permute.xlu2 %v833_v5  ;;  %358 = vst.msk [vmem:[#allocation2] sm:$0x1] %vm357_vm2, %v834_v14  ;;  %vm360_vm4 = vcmask 253952   ;;  %vm469_vm5 = vcmask 1043456   ;;  %vm465_vm6 = vcmask 64512   ;;  %v681_v36 = vld [vmem:[%s1031_s5 + $0x8] sm:$0xff] }
  0x1b   : > { %v362_v3 = vld [vmem:[%s351_s4] sm:$0xf]  ;;  %359 = vst.msk [vmem:[#allocation3] sm:$0x1] %vm357_vm2, %v835_v21  ;;  %529 = vmatpush.bf16.msra.mxu3 %v681_v36  ;;  %s577_s28 = sshll.u32 %s344_s27, 4  ;;  %s579_s29 = sshll.u32 %s575_s24, 4  ;;  %s578_s28 = int_to_ptr.vmem [resolvable:$true] %s577_s28  ;;  %s580_s29 = int_to_ptr.hbm [resolvable:$true] %s579_s29 }
  0x1c   : > { %394 = vmatpush.bf16.msra.mxu0 %v678_v2  ;;  %361 = vst.msk [vmem:[#allocation4] sm:$0x1] %vm360_vm4, %v835_v21  ;;  %v470_v28 = vsel %vm469_vm5, %v362_v3, 0  ;;  %v680_v50 = vld [vmem:[%s1031_s5] sm:$0xff]  ;;  %vm564_vm7 = vcmask 24576   ;;  %s767_s10 = sshra.s32 %s580_s29, 4  ;;  %s768_s10 = int_to_ptr.hbm [resolvable:$true] %s767_s10 }
  0x1d   : > { %479 = vmatpush.bf16.msra.mxu2 %v470_v28  ;;  %v682_v51 = vld [vmem:[%s1033_s7] sm:$0xff]  ;;  %s769_s4 = scalar_lea.hbm %s768_s10, 1  ;;  %p774_p1 = scmp.lt.s32.totalorder %s768_s10, %s1035_s9 }
  0x1e   : > { %v502_v57 = vld [vmem:[%s1032_s6] sm:$0x1]  ;;  %p770_p12 = scmp.ne.s32.totalorder %s768_s10, %s769_s4  ;;  %p775_p2 = scmp.lt.s32.totalorder %s773_s21, %s769_s4 }
  0x1f   : > { %659 = vmatmul.msk.bf16.vlgmr.msra.gmra.mxu0 %vm383_vm0, %v362_v3  ;;  %530 = vmatpush.bf16.msra.mxu3 %v680_v50  ;;  %v541_v63 = vld [vmem:[%s1034_s8] sm:$0x1] }
  0x20   : > { %p771_p13 = pnand %p770_p12, %p929_p4  ;;  %p776_p3 = por %p775_p2, %p774_p1 }
  0x21   : > { %v430_v22 = vld [vmem:[#allocation2] sm:$0x1]  ;;  %558 = vmatpush.bf16.msrb.mxu2 %v682_v51 }
  0x22   : > { %v448_v37 = vld [vmem:[#allocation3] sm:$0x1]  ;;  %p772_p0 = pneg %p771_p13 }
  0x23   : > { %v456_v44 = vld [vmem:[#allocation4] sm:$0x1] }
  0x24   : > { %p777_p5 = pnand %p776_p3, %p772_p0 }
  0x8b   : > { %v407_v15 = vpop.permute.xlu0 %406 }
  0x8c   : > { %v409_v16 = vperm.slane %v407_v15, 0 }
  0x9c   : > { %v396_v7 = vpop.f32.mrf.mxu0 }
  0x9d   : > { %v397_v8 = vadd.f32 %v744_v6, %v396_v7 }
  0x9f   : > { %745 = vtanh.f32 %v397_v8 }
  0xa4   : > { %v398_v9 = vpop.f32.mrf.mxu0 }
  0xa5   : > { %v746_v10 = vpop.eup %745 }
  0xa6   : > { %v402_v11 = vpack.c.bf16 %v746_v10, %v746_v10 }
  0xa8   : > { %v415_v12 = vsel %vm410_vm1, %v402_v11, 0 }
  0xa9   : > { %424 = vmatpush.bf16.xpose.msra.mxu1 %v415_v12 }
  0xb0   : > { %660 = vmatmul.msk.bf16.vlgmr.msra.gmra.mxu1 %vm410_vm1, %v401_v13 }
 0x12d   : > { %v426_v17 = vpop.f32.mrf.mxu1 }
 0x12e   : > { %v427_v18 = vadd.f32 %v426_v17, %v409_v16 }
 0x130   : > { %v432_v19 = vsel %vm431_vm3, %v427_v18, -inf }
 0x131   : > { %433 = vmax.xlane.f32.xlu0 %v432_v19 }
 0x135   : > { %v428_v20 = vpop.f32.mrf.mxu1 }
 0x1a4   : > { %v434_v23 = vpop.xlane.xlu0 %433 }
 0x1a5   : > { %v435_v24 = vmax.f32 %v430_v22, %v434_v23 }
 0x1a7   : > { %v436_v25 = vsub.f32 %v430_v22, %v435_v24  ;;  %488 = vst.msk [vmem:[#allocation2] sm:$0x1] %vm357_vm2, %v435_v24  ;;  %441 = vperm.xlu1 %742, %v435_v24  }
 0x1a9   : > { %v437_v26 = vmul.f32 1.442695, %v436_v25 }
 0x1ab   : > { %747 = vpow2.f32 %v437_v26 }
 0x1b1   : > { %v748_v27 = vpop.eup %747 }
 0x1b2   : > { %459 = vperm.xlu2 %743, %v748_v27   ;;  %v449_v38 = vmul.f32 %v748_v27, %v448_v37 }
 0x20c   : > { %v460_v41 = vpop.permute.xlu2 %459 }
 0x20d   : > { %v462_v43 = vperm.slane %v460_v41, 0 }
 0x20f   : > { %v463_v45 = vmul.f32 %v462_v43, %v456_v44 }
 0x219   : > { %v442_v29 = vpop.permute.xlu1 %441 }
 0x21a   : > { %v444_v30 = vperm.slane %v442_v29, 0 }
 0x21c   : > { %v445_v31 = vsub.f32 %v427_v18, %v444_v30 }
 0x21e   : > { %v446_v32 = vmul.f32 1.442695, %v445_v31 }
 0x220   : > { %749 = vpow2.f32 %v446_v32 }
 0x226   : > { %v750_v33 = vpop.eup %749 }
 0x227   : > { %v450_v34 = vsel %vm431_vm3, %v750_v33, 0.0  ;;  %v464_v35 = vpack.c.bf16 %v750_v33, %v750_v33 }
 0x228   : > { %451 = vadd.xlane.f32.xlu1 %v450_v34 }
 0x229   : > { %661 = vmatmul.msk.bf16.vlgmr.msra.gmra.mxu2 %vm465_vm6, %v464_v35 }
 0x29b   : > { %v452_v39 = vpop.xlane.xlu1 %451 }
 0x29c   : > { %v453_v40 = vadd.f32 %v452_v39, %v449_v38 }
 0x29e   : > { %455 = vst.msk [vmem:[#allocation3] sm:$0x1] %vm357_vm2, %v453_v40 }
 0x2a5   : > { %v493_v42 = vld [vmem:[#allocation3] sm:$0x1] }
 0x2a6   : > { %751 = vrcp.f32 %v493_v42 }
 0x2ac   : > { %v752_v46 = vpop.eup %751  ;;  %v481_v47 = vpop.f32.mrf.mxu2 }
 0x2ad   : > { %v485_v48 = vadd.f32 %v481_v47, %v463_v45  ;;  %497 = vperm.xlu2 %743, %v752_v46  }
 0x2af   : > { %487 = vst.msk [vmem:[#allocation4] sm:$0x1] %vm360_vm4, %v485_v48 }
 0x2b4   : > { %v483_v49 = vpop.f32.mrf.mxu2 }
 0x2b6   : > { %v492_v54 = vld [vmem:[#allocation4] sm:$0x1] }
 0x307   : > { %v498_v52 = vpop.permute.xlu2 %497 }
 0x308   : > { %v500_v53 = vperm.slane %v498_v52, 0 }
 0x30a   : > { %v501_v55 = vmul.f32 %v500_v53, %v492_v54 }
 0x30c   : > { %v503_v56 = vpack.c.bf16 %v501_v55, %v501_v55 }
 0x30e   : > { %670 = vmatmul.msk.bf16.vlgmr.msra.gmra.mxu3 %vm383_vm0, %v503_v56 }
 0x391   : > { %v532_v58 = vpop.f32.mrf.mxu3 }
 0x392   : > { %v536_v59 = vadd.f32 %v532_v58, %v502_v57 }
 0x394   : > { %v537_v60 = vmax.f32 %v536_v59, 0.0 }
 0x396   : > { %v538_v61 = vpack.c.bf16 %v537_v60, %v537_v60 }
 0x398   : > { %675 = vmatmul.msk.bf16.vlgmr.msrb.gmra.mxu2 %vm410_vm1, %v538_v61 }
 0x399   : > { %v534_v62 = vpop.f32.mrf.mxu3 }
 0x41b   : > { %v560_v0 = vpop.f32.mrf.mxu2 }
 0x41c   : > { %v561_v1 = vadd.f32 %v560_v0, %v541_v63 }
 0x41e   : > { %565 = vst.msk [vmem:[%s344_s27] sm:$0x1] %vm564_vm7, %v561_v1 }
 0x41f   : > { %780 = shalt.err (!%p777_p5)
}
 0x420   : > { %683 = dma.vmem_to_hbm [thread:$0]  (%p929_p4), %s578_s28, 16, %s580_s29, %s567_s30  }
 0x423   : > { %v562_v2 = vpop.f32.mrf.mxu2 }
 0x424 PF: > { %p689_p6 = scmp.ge.s32.totalorder %s831_s16, 2  ;;  %s591_s17 = sand.u32 1, %s811_s11  }
 0x425   : > { %s592_s26 = scalar_lea.sflag [#allocation7], %s591_s17 }
 0x426   : > { %p686_p7 = pnand %p689_p6, %p936_p8 }
 0x428   : > { %p687_p9 = pneg %p686_p7 }
 0x42a   : > { %806 = dma.done.wait (%p687_p9), %s592_s26, 16  }
 0x42b   : > { %808 = vsyncadd (%p687_p9), %s592_s26, 4294967280  ;;  %s24_s16 = sadd.s32 1, %s831_s16   ;;  %s1038_s11 = smov %s815_s12 }
 0x42c   : > { %p21_p10 = scmp.ge.s32.totalorder %s24_s16, 4   ;;  %s1039_s12 = smov %s819_s13 }
 0x42d   : > { %s1040_s13 = smov %s942_s23  ;;  %s1041_s14 = smov %s827_s15 }
 0x42e   : > { %s1042_s15 = smov %s1044_s18  ;;  %23 = sbr.rel (!%p21_p10) target bundleno = 7 (0x7), region = 99 }
 0x433   :  { %597 = vsyncpa [#allocation7], 1 }
 0x434   :  { %599 = vsyncpa [#allocation7 + $0x1], 1 }

</bundles_post_ra>
